<compile_context>
chip_gen: v6e
topology: v6e:2x2x1
jax: 0.10.0
libtpu: 0.0.40
codegen_flags: <defaults>
</compile_context>

<pallas_src>
import jax
import jax.numpy as jnp
from jax.experimental import pallas as pl
from jax.experimental.pallas import tpu as pltpu

HIDDEN = 128
LANE = 128


def _round_up(x, m):
    return ((x + m - 1) // m) * m


def _mlp_kernel(x_ref, w1_ref, b1_ref, w2_ref, b2_ref, o_ref):
    # fc1: bf16 operands on the MXU, f32 accumulation.
    x = x_ref[...].astype(w1_ref.dtype)
    h = jnp.dot(x, w1_ref[...], preferred_element_type=jnp.float32)
    h = jnp.maximum(h + b1_ref[...], 0.0)
    # fc2: bf16 operands, f32 accumulation, then bias.
    h = h.astype(w2_ref.dtype)
    out = jnp.dot(h, w2_ref[...], preferred_element_type=jnp.float32)
    out = out + b2_ref[...]
    o_ref[...] = out.astype(o_ref.dtype)


def prepare_params(w1, b1, w2, b2, *, param_dtype=jnp.bfloat16):
    """One-time parameter prep (hoisted out of the per-call path).

    w1: [128, input_size], b1: [128], w2: [num_classes, 128], b2: [num_classes]
    (PyTorch nn.Linear conventions).  Weights are transposed to [in, out] and
    cast to bf16; fc2 columns are zero-padded to a multiple of 128 lanes with a
    -inf bias so the padded logits are argmax/softmax-safe even when unsliced.
    """
    hidden = w1.shape[0]
    num_classes = w2.shape[0]
    c_pad = _round_up(max(num_classes, 1), LANE)

    w1_t = jnp.asarray(w1, jnp.float32).T.astype(param_dtype)       # [in, 128]
    b1_2d = jnp.asarray(b1, jnp.float32).reshape(1, hidden)

    w2_t = jnp.zeros((hidden, c_pad), jnp.float32)
    w2_t = w2_t.at[:, :num_classes].set(jnp.asarray(w2, jnp.float32).T)
    w2_t = w2_t.astype(param_dtype)                                  # [128, c_pad]
    b2_2d = jnp.full((1, c_pad), -jnp.inf, jnp.float32)
    b2_2d = b2_2d.at[:, :num_classes].set(jnp.asarray(b2, jnp.float32))

    return dict(w1_t=w1_t, b1=b1_2d, w2_t=w2_t, b2=b2_2d,
                num_classes=num_classes, c_pad=c_pad)


def _plan_tiles(B, in_f, c_pad, out_bytes, vmem_budget_bytes):
    """Pick TB (multiple of 8) from a VMEM byte budget; return (TB, est_bytes)."""
    B8 = _round_up(max(B, 1), 8)
    # Resident weights/biases (assume double-buffered by the pipeline; bf16).
    w_bytes = 2 * (in_f * HIDDEN * 2) + 2 * (HIDDEN * c_pad * 2) \
        + 2 * (HIDDEN + c_pad) * 4
    # Per batch-row VMEM: x tile (f32, double-buffered) + out tile
    # (double-buffered) + f32 hidden intermediate + its bf16 copy.
    row_bytes = 2 * in_f * 4 + 2 * c_pad * out_bytes + HIDDEN * 4 + HIDDEN * 2
    avail = max(vmem_budget_bytes - w_bytes, 8 * row_bytes)
    tb_cap = max(8, (avail // row_bytes) // 8 * 8)
    tb_cap = min(tb_cap, 4096)

    tb = min(tb_cap, B8)
    # v7x megacore: for reasonably large batches keep >= 2 grid steps so both
    # TensorCores get work (no-op cost on v5e/v6e single-TC chips).
    if B8 >= 256 and tb >= B8:
        tb = min(tb, _round_up(-(-B8 // 2), 8))

    est_bytes = w_bytes + tb * row_bytes
    return tb, est_bytes


def classifier_forward(x, params, *, out_dtype=jnp.float32, slice_output=True,
                       vmem_budget_bytes=44 * 1024 * 1024):
    """x: [B, input_size] float32; params from prepare_params.

    Returns logits [B, num_classes] (out_dtype) by default; with
    slice_output=False returns the lane-padded [B, c_pad] logits (padded
    columns hold -inf, so argmax/softmax over them is unaffected).
    """
    x = jnp.asarray(x, jnp.float32)
    B, in_f = x.shape
    hidden = params["w1_t"].shape[1]
    c_pad = params["c_pad"]
    num_classes = params["num_classes"]

    out_bytes = jnp.dtype(out_dtype).itemsize
    TB, est_bytes = _plan_tiles(B, in_f, c_pad, out_bytes, vmem_budget_bytes)

    # Only pad the batch to a sublane multiple (<= 7 rows, only when needed);
    # any partial trailing TB block is handled by Pallas' masked writeback, so
    # no full-array jnp.pad pass over x is required.
    B8 = _round_up(B, 8)
    if B8 != B:
        x = jnp.pad(x, ((0, B8 - B), (0, 0)))
    n_tiles = pl.cdiv(B8, TB)

    vmem_limit = int(min(64 * 1024 * 1024,
                         max(32 * 1024 * 1024, est_bytes + 8 * 1024 * 1024)))

    out = pl.pallas_call(
        _mlp_kernel,
        out_shape=jax.ShapeDtypeStruct((B8, c_pad), out_dtype),
        grid=(n_tiles,),
        in_specs=[
            pl.BlockSpec((TB, in_f), lambda i: (i, 0)),        # x: batch-tiled
            pl.BlockSpec((in_f, hidden), lambda i: (0, 0)),    # w1: resident (bf16)
            pl.BlockSpec((1, hidden), lambda i: (0, 0)),       # b1: resident
            pl.BlockSpec((hidden, c_pad), lambda i: (0, 0)),   # w2: resident (bf16)
            pl.BlockSpec((1, c_pad), lambda i: (0, 0)),        # b2: resident
        ],
        out_specs=pl.BlockSpec((TB, c_pad), lambda i: (i, 0)),  # lane-dense out
        compiler_params=pltpu.CompilerParams(
            dimension_semantics=("parallel",),
            vmem_limit_bytes=vmem_limit,
        ),
    )(x, params["w1_t"], params["b1"], params["w2_t"], params["b2"])

    if slice_output:
        return out[:B, :num_classes]
    return out[:B] if B8 != B else out


def init_params(key, input_size, num_classes, hidden=HIDDEN):
    """Deterministic init mimicking torch.nn.Linear default (uniform +/- 1/sqrt(fan_in))."""
    k1, k2, k3, k4 = jax.random.split(key, 4)
    bound1 = 1.0 / jnp.sqrt(input_size)
    bound2 = 1.0 / jnp.sqrt(hidden)
    w1 = jax.random.uniform(k1, (hidden, input_size), jnp.float32, -bound1, bound1)
    b1 = jax.random.uniform(k2, (hidden,), jnp.float32, -bound1, bound1)
    w2 = jax.random.uniform(k3, (num_classes, hidden), jnp.float32, -bound2, bound2)
    b2 = jax.random.uniform(k4, (num_classes,), jnp.float32, -bound2, bound2)
    return w1, b1, w2, b2


def _reference(x, w1, b1, w2, b2):
    return jnp.maximum(x @ w1.T + b1, 0.0) @ w2.T + b2


if __name__ == "__main__":
    key = jax.random.PRNGKey(0)
    input_size = 32
    num_classes = 10

    kx, kp, kx2 = jax.random.split(key, 3)
    w1, b1, w2, b2 = init_params(kp, input_size, num_classes)

    # One-time parameter prep (transposes / padding / bf16 cast) outside the hot path.
    params = prepare_params(w1, b1, w2, b2)
    fwd = jax.jit(lambda xx: classifier_forward(xx, params))

    # Small canonical case.
    batch = 8
    x = jax.random.normal(kx, (batch, input_size), jnp.float32)
    out = jax.block_until_ready(fwd(x))
    ref = _reference(x, w1, b1, w2, b2)
    assert out.shape == (batch, num_classes)
    assert jnp.allclose(out, ref, atol=3e-2, rtol=3e-2), float(jnp.max(jnp.abs(out - ref)))

    # Larger, non-divisible batch: exercises the multi-tile parallel grid and
    # the partial trailing block (no full jnp.pad of x).
    batch2 = 260
    x2 = jax.random.normal(kx2, (batch2, input_size), jnp.float32)
    out2 = jax.block_until_ready(fwd(x2))
    ref2 = _reference(x2, w1, b1, w2, b2)
    assert out2.shape == (batch2, num_classes)
    assert jnp.allclose(out2, ref2, atol=3e-2, rtol=3e-2), float(jnp.max(jnp.abs(out2 - ref2)))

    print("KERNEL_OK")
</pallas_src>

<mosaic_0001>
module attributes {stable_mosaic.version = 11 : i64} {
  func.func @_mlp_kernel(%arg0: i32, %arg1: memref<8x32xf32, #tpu.memory_space<vmem>>, %arg2: memref<32x128xbf16, #tpu.memory_space<vmem>>, %arg3: memref<1x128xf32, #tpu.memory_space<vmem>>, %arg4: memref<128x128xbf16, #tpu.memory_space<vmem>>, %arg5: memref<1x128xf32, #tpu.memory_space<vmem>>, %arg6: memref<8x128xf32, #tpu.memory_space<vmem>>) attributes {dimension_semantics = [#tpu.dimension_semantics<parallel>], iteration_bounds = array<i64: 1>, scalar_prefetch = 0 : i64, scratch_operands = 0 : i64, tpu.core_type = #tpu.core_type<tc>, window_params = [{transform_indices = @transform_0, window_bounds = array<i64: 8, 32>}, {pipeline_mode = #tpu.pipeline_mode<synchronous>, transform_indices = @transform_1, window_bounds = array<i64: 32, 128>}, {pipeline_mode = #tpu.pipeline_mode<synchronous>, transform_indices = @transform_2, window_bounds = array<i64: 1, 128>}, {pipeline_mode = #tpu.pipeline_mode<synchronous>, transform_indices = @transform_3, window_bounds = array<i64: 128, 128>}, {pipeline_mode = #tpu.pipeline_mode<synchronous>, transform_indices = @transform_4, window_bounds = array<i64: 1, 128>}, {transform_indices = @transform_5, window_bounds = array<i64: 8, 128>}]} {
    %c0 = arith.constant 0 : index
    %c0_0 = arith.constant 0 : index
    %0 = vector.load %arg1[%c0, %c0_0] : memref<8x32xf32, #tpu.memory_space<vmem>>, vector<8x32xf32>
    %1 = arith.truncf %0 : vector<8x32xf32> to vector<8x32xbf16>
    %c0_1 = arith.constant 0 : index
    %c0_2 = arith.constant 0 : index
    %2 = vector.load %arg2[%c0_1, %c0_2] : memref<32x128xbf16, #tpu.memory_space<vmem>>, vector<32x128xbf16>
    %cst = arith.constant dense<0.000000e+00> : vector<8x128xf32>
    %3 = tpu.matmul %1, %2, %cst {dimension_numbers = #tpu.dot_dimension_numbers<[1], [0], [0], [1], [0, 0, 1, 1], [], []>} : vector<8x32xbf16>, vector<32x128xbf16>, vector<8x128xf32> -> vector<8x128xf32>
    %c0_3 = arith.constant 0 : index
    %c0_4 = arith.constant 0 : index
    %4 = vector.load %arg3[%c0_3, %c0_4] : memref<1x128xf32, #tpu.memory_space<vmem>>, vector<1x128xf32>
    %5 = vector.broadcast %4 : vector<1x128xf32> to vector<8x128xf32>
    %6 = arith.addf %3, %5 : vector<8x128xf32>
    %cst_5 = arith.constant 0.000000e+00 : f32
    %7 = vector.broadcast %cst_5 : f32 to vector<8x128xf32>
    %8 = arith.maximumf %6, %7 : vector<8x128xf32>
    %9 = arith.truncf %8 : vector<8x128xf32> to vector<8x128xbf16>
    %c0_6 = arith.constant 0 : index
    %c0_7 = arith.constant 0 : index
    %10 = vector.load %arg4[%c0_6, %c0_7] : memref<128x128xbf16, #tpu.memory_space<vmem>>, vector<128x128xbf16>
    %cst_8 = arith.constant dense<0.000000e+00> : vector<8x128xf32>
    %11 = tpu.matmul %9, %10, %cst_8 {dimension_numbers = #tpu.dot_dimension_numbers<[1], [0], [0], [1], [0, 0, 1, 1], [], []>} : vector<8x128xbf16>, vector<128x128xbf16>, vector<8x128xf32> -> vector<8x128xf32>
    %c0_9 = arith.constant 0 : index
    %c0_10 = arith.constant 0 : index
    %12 = vector.load %arg5[%c0_9, %c0_10] : memref<1x128xf32, #tpu.memory_space<vmem>>, vector<1x128xf32>
    %13 = vector.broadcast %12 : vector<1x128xf32> to vector<8x128xf32>
    %14 = arith.addf %11, %13 : vector<8x128xf32>
    %c0_11 = arith.constant 0 : index
    %c0_12 = arith.constant 0 : index
    %15 = vector.load %arg6[%c0_11, %c0_12] : memref<8x128xf32, #tpu.memory_space<vmem>>, vector<8x128xf32>
    tpu.vector_store %arg6[%c0_11, %c0_12], %14 {strides = array<i32>} : memref<8x128xf32, #tpu.memory_space<vmem>>, vector<8x128xf32>,
    return
  }
  func.func @transform_0(%arg0: i32) -> (i32, i32) {
    %c0_i32 = arith.constant 0 : i32
    %c0_i32_0 = arith.constant 0 : i32
    return %arg0, %c0_i32 : i32, i32
  }
  func.func @transform_1(%arg0: i32) -> (i32, i32) {
    %c0_i32 = arith.constant 0 : i32
    %c0_i32_0 = arith.constant 0 : i32
    %c0_i32_1 = arith.constant 0 : i32
    return %c0_i32, %c0_i32_0 : i32, i32
  }
  func.func @transform_2(%arg0: i32) -> (i32, i32) {
    %c0_i32 = arith.constant 0 : i32
    %c0_i32_0 = arith.constant 0 : i32
    %c0_i32_1 = arith.constant 0 : i32
    return %c0_i32, %c0_i32_0 : i32, i32
  }
  func.func @transform_3(%arg0: i32) -> (i32, i32) {
    %c0_i32 = arith.constant 0 : i32
    %c0_i32_0 = arith.constant 0 : i32
    %c0_i32_1 = arith.constant 0 : i32
    return %c0_i32, %c0_i32_0 : i32, i32
  }
  func.func @transform_4(%arg0: i32) -> (i32, i32) {
    %c0_i32 = arith.constant 0 : i32
    %c0_i32_0 = arith.constant 0 : i32
    %c0_i32_1 = arith.constant 0 : i32
    return %c0_i32, %c0_i32_0 : i32, i32
  }
  func.func @transform_5(%arg0: i32) -> (i32, i32) {
    %c0_i32 = arith.constant 0 : i32
    %c0_i32_0 = arith.constant 0 : i32
    return %arg0, %c0_i32 : i32, i32
  }
}

</mosaic_0001>

<bundles_post_ra>
// kernel: _lambda_.1
= control target key start
LH: loop header
LB: loop body
LE: loop exit
PB: predicated region body
PF: predicated region fallthrough
CT: control target
= control target key end

     0   :  { %10 = vsyncpa [#allocation3], 0  ;;  %s473_s0 = inlined_call_operand.hbm [shape: f32[8,32], index: 0, kind: input, shape index: {}]   ;;  %s474_s1 = inlined_call_operand.hbm [shape: bf16[32,128], index: 1, kind: input, shape index: {}]   ;;  %s475_s2 = inlined_call_operand.vmem [shape: f32[1,128], index: 2, kind: input, shape index: {}]   ;;  %s476_s3 = inlined_call_operand.hbm [shape: bf16[128,128], index: 3, kind: input, shape index: {}]   ;;  %s477_s4 = inlined_call_operand.vmem [shape: f32[1,128], index: 4, kind: input, shape index: {}]   ;;  %s478_s5 = inlined_call_operand.hbm [shape: f32[8,128], index: 5, kind: output, shape index: {}]  }
   0x1   :  { %11 = vsyncpa [#allocation6], 0 }
   0x2   :  { %12 = vsyncpa [#allocation4], 0  ;;  %s417_s18 = smov [#allocation5]  }
   0x3   :  { %s28_s19 = sshll.u32 %s417_s18, 4  ;;  %s29_s19 = int_to_ptr.vmem [resolvable:$true] %s28_s19 }
   0x4   :  { %s339_s20 = scalar_lea.vmem %s29_s19, 256  ;;  %p344_p1 = scmp.lt.s32.totalorder %s29_s19, %s29_s19 }
   0x5   :  { %p340_p0 = scmp.ne.s32.totalorder %s29_s19, %s339_s20  ;;  %p345_p2 = scmp.lt.s32.totalorder %s339_s20, %s339_s20 }
   0x7   :  { %p346_p3 = por %p345_p2, %p344_p1 }
   0x9   :  { %p347_p4 = pnand %p346_p3, %p340_p0 }
   0xb   :  { %350 = shalt.err (!%p347_p4)
}
   0xc   :  { %s418_s21 = smov 64   ;;  %s419_s22 = smov 4  }
   0xd   :  { %34 = dma.hbm_to_vmem [thread:$0]  %s474_s1, 256, %s29_s19, [#allocation6], %s418_s21, %s418_s21, %s419_s22  }
   0xe   :  { %s420_s25 = smov [#allocation2]   ;;  %s421_s27 = smov [#allocation7]  }
   0xf   :  { %s19_s26 = sshll.u32 %s420_s25, 4  ;;  %s42_s28 = sshll.u32 %s421_s27, 4  ;;  %s20_s26 = int_to_ptr.vmem [resolvable:$true] %s19_s26  ;;  %s43_s28 = int_to_ptr.vmem [resolvable:$true] %s42_s28 }
  0x10   :  { %s359_s29 = scalar_lea.vmem %s20_s26, 128  ;;  %p364_p6 = scmp.lt.s32.totalorder %s20_s26, %s20_s26 }
  0x11   :  { %p360_p5 = scmp.ne.s32.totalorder %s20_s26, %s359_s29  ;;  %p365_p7 = scmp.lt.s32.totalorder %s359_s29, %s359_s29 }
  0x13   :  { %p366_p8 = por %p365_p7, %p364_p6 }
  0x15   :  { %p367_p9 = pnand %p366_p8, %p360_p5 }
  0x17   :  { %370 = shalt.err (!%p367_p9)
}
  0x18   :  { %22 = dma.hbm_to_vmem [thread:$0]  %s473_s0, 128, %s20_s26, [#allocation3]  }
  0x19   :  { %s379_s7 = scalar_lea.vmem %s43_s28, 1024  ;;  %p384_p11 = scmp.lt.s32.totalorder %s43_s28, %s43_s28 }
  0x1a   :  { %p380_p10 = scmp.ne.s32.totalorder %s43_s28, %s379_s7  ;;  %p385_p12 = scmp.lt.s32.totalorder %s379_s7, %s379_s7 }
  0x1c   :  { %p386_p13 = por %p385_p12, %p384_p11 }
  0x1e   :  { %p387_p0 = pnand %p386_p13, %p380_p10 }
  0x20   :  { %390 = shalt.err (!%p387_p0)
}
  0x21   :  { %48 = dma.hbm_to_vmem [thread:$0]  %s476_s3, 1024, %s43_s28, [#allocation6], %s418_s21, %s418_s21, %s419_s22  }
  0x22   :  { %411 = dma.done.wait [#allocation3], 128  }
  0x23   :  { %412 = vsyncadd [#allocation3], 4294967168 }
  0x24   :  { %413 = dma.done.wait [#allocation6], 1280  }
  0x25   :  { %414 = vsyncadd [#allocation6], 4294966016  ;;  %v422_v0 = vmov 0.0   ;;  %vm423_vm0 = vmmov 0   ;;  %v321_v1 = vld [vmem:[#allocation5 + $0x8] sm:$0xff]   ;;  %v322_v2 = vld [vmem:[#allocation5] sm:$0xff]  }
  0x26   :  { %285 = vmatprep.subr.bf16.mxu0 %v422_v0  ;;  %289 = vmatprep.mubr.msk.bf16.mxu0 %vm423_vm0, %v422_v0  ;;  %v61_v3 = vld [vmem:[#allocation2] sm:$0xff]  ;;  %v323_v4 = vld [vmem:[#allocation7 + $0x38] sm:$0xff]   ;;  %v324_v6 = vld [vmem:[#allocation7 + $0x30] sm:$0xff]   ;;  %vm86_vm1 = vcmask 261120   ;;  %s424_s11 = smov [#allocation8]  }
  0x27   :  { %293 = vmatprep.subr.bf16.mxu1 %v422_v0  ;;  %309 = vmatprep.mubr.msk.bf16.mxu1 %vm423_vm0, %v422_v0  ;;  %v62_v5 = vpack.c.bf16 %v61_v3, %v61_v3  ;;  %v325_v7 = vld [vmem:[#allocation7 + $0x28] sm:$0xff]   ;;  %v326_v8 = vld [vmem:[#allocation7 + $0x20] sm:$0xff]   ;;  %v327_v9 = vld [vmem:[#allocation7 + $0x18] sm:$0xff]   ;;  %s250_s12 = sshll.u32 %s424_s11, 4  ;;  %s251_s12 = int_to_ptr.vmem [resolvable:$true] %s250_s12 }
  0x28   :  { %286 = vmatpush3.bf16.msra.mxu0 %v321_v1  ;;  %294 = vmatpush3.bf16.msra.mxu1 %v323_v4  ;;  %v328_v10 = vld [vmem:[#allocation7 + $0x10] sm:$0xff]   ;;  %v329_v11 = vld [vmem:[#allocation7 + $0x8] sm:$0xff]   ;;  %v330_v12 = vld [vmem:[#allocation7] sm:$0xff]   ;;  %p396_p2 = scmp.lt.s32.totalorder %s251_s12, %s251_s12 }
  0x29   :  { %287 = vmatprep.subr.bf16.mxu0 %v422_v0  ;;  %295 = vmatprep.subr.bf16.mxu1 %v422_v0  ;;  %v260_v13 = vld [vmem:[%s475_s2] ss:$0 sm:$0xff]  ;;  %s391_s2 = scalar_lea.vmem %s251_s12, 128 }
  0x2a   :  { %v264_v21 = vld [vmem:[%s477_s4] ss:$0 sm:$0xff]  ;;  %p392_p1 = scmp.ne.s32.totalorder %s251_s12, %s391_s2  ;;  %p397_p3 = scmp.lt.s32.totalorder %s391_s2, %s391_s2 }
  0x2c   :  { %288 = vmatpush3.bf16.msra.mxu0 %v322_v2  ;;  %296 = vmatpush3.bf16.msra.mxu1 %v324_v6  ;;  %p398_p4 = por %p397_p3, %p396_p2 }
  0x2d   :  { %297 = vmatprep.subr.bf16.mxu1 %v422_v0 }
  0x2e   :  { %p399_p5 = pnand %p398_p4, %p392_p1 }
  0x2f   :  { %290 = vmatmul.mubr.msk.bf16.vlgmr.msra.gmra.mxu0 %vm86_vm1, %v62_v5 }
  0x30   :  { %298 = vmatpush3.bf16.msra.mxu1 %v325_v7 }
  0x31   :  { %299 = vmatprep.subr.bf16.mxu1 %v422_v0 }
  0x34   :  { %300 = vmatpush3.bf16.msra.mxu1 %v326_v8 }
  0x35   :  { %301 = vmatprep.subr.bf16.mxu1 %v422_v0 }
  0x38   :  { %302 = vmatpush3.bf16.msra.mxu1 %v327_v9 }
  0x39   :  { %303 = vmatprep.subr.bf16.mxu1 %v422_v0 }
  0x3c   :  { %304 = vmatpush3.bf16.msra.mxu1 %v328_v10 }
  0x3d   :  { %305 = vmatprep.subr.bf16.mxu1 %v422_v0 }
  0x40   :  { %306 = vmatpush3.bf16.msra.mxu1 %v329_v11 }
  0x41   :  { %307 = vmatprep.subr.bf16.mxu1 %v422_v0 }
  0x44   :  { %308 = vmatpush3.bf16.msra.mxu1 %v330_v12 }
  0xef   :  { %v124_v14 = vpop.f32.mrf.mxu0 }
  0xf0   :  { %v125_v15 = vadd.f32 %v260_v13, %v124_v14 }
  0xf1   :  { %v291_v16 = vpop.f32.mrf.mxu0 }
  0xf2   :  { %v130_v17 = vmax.f32 %v125_v15, 0.0 }
  0xf3   :  { %v127_v18 = vpop.f32.mrf.mxu0 }
  0xf4   :  { %v131_v19 = vpack.c.bf16 %v130_v17, %v130_v17 }
  0xf5   :  { %v292_v20 = vpop.f32.mrf.mxu0 }
  0xf6   :  { %310 = vmatmul.mubr.bf16.vlgmr.msra.gmra.mxu1 %v131_v19 }
 0x1b6   :  { %v237_v22 = vpop.f32.mrf.mxu1 }
 0x1b7   :  { %v238_v23 = vadd.f32 %v264_v21, %v237_v22 }
 0x1b8   :  { %v311_v24 = vpop.f32.mrf.mxu1 }
 0x1b9   :  { %243 = vst [vmem:[#allocation8] sm:$0xff] %v238_v23 }
 0x1ba   :  { %v240_v25 = vpop.f32.mrf.mxu1 }
 0x1bb   :  { %402 = shalt.err (!%p399_p5)
}
 0x1bc   :  { %253 = dma.vmem_to_hbm [thread:$0]  %s251_s12, 128, %s478_s5, [#allocation4]   ;;  %v312_v26 = vpop.f32.mrf.mxu1 }
 0x1bd   :  { %415 = dma.done.wait [#allocation4], 128  }
 0x1be   :  { %416 = vsyncadd [#allocation4], 4294967168 }
 0x1bf   :  { %257 = vsyncpa [#allocation3], 1 }
 0x1c0   :  { %258 = vsyncpa [#allocation6], 1 }
 0x1c1   :  { %259 = vsyncpa [#allocation4], 1 }

</bundles_post_ra>
